<compile_context>
chip_gen: v5e
topology: v5e:2x2
jax: 0.10.0
libtpu: 0.0.40
codegen_flags: <defaults>
</compile_context>

<pallas_src>
import functools

import jax
import jax.numpy as jnp
from jax.experimental import pallas as pl
from jax.experimental.pallas import tpu as pltpu


def mlp_kernel(x1_ref, x2_ref, w1_ref, b1_ref, w2_ref, b2_ref, o_ref):
    # In-kernel bf16 cast (VPU work hidden under the input DMA).
    x1 = x1_ref[...].astype(jnp.bfloat16)
    x2 = x2_ref[...].astype(jnp.bfloat16)
    # fc1 in split-weight form (static ref slices are views, no copy).
    h = jnp.dot(x1, w1_ref[:256, :], preferred_element_type=jnp.float32)
    h = h + jnp.dot(x2, w1_ref[256:, :], preferred_element_type=jnp.float32)
    h = h + b1_ref[...]
    # ReLU
    h = jnp.maximum(h, 0.0)
    # Dropout: identity at inference.
    # TODO(synk): training-mode dropout would need pltpu.prng_seed / prng_random_bits per tile.
    # fc2 (tiny): bf16 operands, f32 accumulate.  Output last-dim=2 -> masked stores,
    # negligible traffic; do not bother making it lane-dense.
    o = jnp.dot(h.astype(jnp.bfloat16), w2_ref[...],
                preferred_element_type=jnp.float32) + b2_ref[...]
    o_ref[...] = o.astype(o_ref.dtype)


def prepare_params(torch_layout_params):
    """One-time parameter prep from PyTorch-layout tensors.

    Expects: fc1.weight [64, 512], fc1.bias [64], fc2.weight [2, 64], fc2.bias [2].
    Transposes to [in, out] and casts weights to bf16 (deliberate inference choice).
    """
    w1 = jnp.asarray(torch_layout_params["fc1.weight"]).T  # [512, 64]
    b1 = jnp.asarray(torch_layout_params["fc1.bias"])      # [64]
    w2 = jnp.asarray(torch_layout_params["fc2.weight"]).T  # [64, 2]
    b2 = jnp.asarray(torch_layout_params["fc2.bias"])      # [2]
    return {
        "w1_bf16": w1.astype(jnp.bfloat16),                 # [512, 64]
        "b1_2d": b1.reshape(1, -1).astype(jnp.float32),     # [1, 64]
        "w2_bf16": w2.astype(jnp.bfloat16),                 # [64, 2]
        "b2_2d": b2.reshape(1, -1).astype(jnp.float32),     # [1, 2]
    }


def _round_up(v, m):
    return ((v + m - 1) // m) * m


@functools.partial(jax.jit, static_argnames=("block_b",))
def my_model_forward(x1, x2, prepared, *, block_b=2048):
    """x1, x2: [B, 256] float32.  Returns [B, 2] float32."""
    B, D1 = x1.shape

    # Batch tile: multiple of 8 (sublanes), capped by block_b for VMEM, and capped
    # at ~half the batch so there are >= 2 grid blocks (both v7x TCs busy) whenever
    # the batch allows it.  All Python ints (static at trace time).
    half = _round_up(max((B + 1) // 2, 1), 8)
    TB = max(8, min(block_b, half))
    grid = (pl.cdiv(B, TB),)

    w1 = prepared["w1_bf16"]
    b1 = prepared["b1_2d"]
    w2 = prepared["w2_bf16"]
    b2 = prepared["b2_2d"]

    const = lambda i: (0, 0)  # weights / biases: resident, DMA'd once

    # Advisory cost estimate, consistent with what is actually DMA'd (f32 activations,
    # bf16 weights, f32 output).
    bytes_accessed = (
        x1.size * 4 + x2.size * 4
        + w1.size * 2 + w2.size * 2
        + b1.size * 4 + b2.size * 4
        + B * 2 * 4
    )
    cost = pl.CostEstimate(
        flops=2 * B * 512 * 64 + 2 * B * 64 * 2,
        transcendentals=0,
        bytes_accessed=bytes_accessed,
    )

    out = pl.pallas_call(
        mlp_kernel,
        out_shape=jax.ShapeDtypeStruct((B, 2), jnp.float32),
        grid=grid,
        in_specs=[
            pl.BlockSpec((TB, D1), lambda i: (i, 0)),   # x1 tile (pipelined, f32)
            pl.BlockSpec((TB, D1), lambda i: (i, 0)),   # x2 tile (pipelined, f32)
            pl.BlockSpec((512, 64), const),             # W1 (bf16, resident)
            pl.BlockSpec((1, 64), const),               # b1 (f32)
            pl.BlockSpec((64, 2), const),               # W2 (bf16)
            pl.BlockSpec((1, 2), const),                # b2 (f32)
        ],
        out_specs=pl.BlockSpec((TB, 2), lambda i: (i, 0)),
        compiler_params=pltpu.CompilerParams(
            dimension_semantics=("parallel",),
            vmem_limit_bytes=32 * 1024 * 1024,
        ),
        cost_estimate=cost,
    )(x1, x2, w1, b1, w2, b2)

    return out


def init_params(key):
    """Deterministic synthetic init in *PyTorch layout* ([out, in] weights),
       mimicking fc1 = Linear(512, 64), fc2 = Linear(64, 2)."""
    k1, k2, k3, k4 = jax.random.split(key, 4)
    bound1 = 1.0 / (512.0 ** 0.5)
    bound2 = 1.0 / (64.0 ** 0.5)
    return {
        "fc1.weight": jax.random.uniform(k1, (64, 512), jnp.float32, -bound1, bound1),
        "fc1.bias": jax.random.uniform(k2, (64,), jnp.float32, -bound1, bound1),
        "fc2.weight": jax.random.uniform(k3, (2, 64), jnp.float32, -bound2, bound2),
        "fc2.bias": jax.random.uniform(k4, (2,), jnp.float32, -bound2, bound2),
    }


def _reference(x1, x2, prepared):
    """Pure-JAX reference with the same bf16-operand / f32-accumulate arithmetic."""
    xb1 = x1.astype(jnp.bfloat16)
    xb2 = x2.astype(jnp.bfloat16)
    w1 = prepared["w1_bf16"]
    h = (jnp.dot(xb1, w1[:256], preferred_element_type=jnp.float32)
         + jnp.dot(xb2, w1[256:], preferred_element_type=jnp.float32)
         + prepared["b1_2d"][0])
    h = jnp.maximum(h, 0.0)
    return (jnp.dot(h.astype(jnp.bfloat16), prepared["w2_bf16"],
                    preferred_element_type=jnp.float32) + prepared["b2_2d"][0])


if __name__ == "__main__":
    key = jax.random.PRNGKey(0)
    kp, kx1, kx2 = jax.random.split(key, 3)
    params = init_params(kp)
    prepared = prepare_params(params)

    # Small demo batch (matches the module's usage): B=2, features=256 each.
    B = 2
    x1 = jax.random.normal(kx1, (B, 256), jnp.float32)
    x2 = jax.random.normal(kx2, (B, 256), jnp.float32)

    out = jax.block_until_ready(my_model_forward(x1, x2, prepared))
    assert out.shape == (B, 2)
    ref = _reference(x1, x2, prepared)
    assert jnp.allclose(out, ref, atol=2e-2, rtol=2e-2)

    # Exercise the multi-block grid and the un-padded remainder path
    # (B=300 with TB=128 -> 3 blocks, last block Pallas-padded, never written OOB).
    B2 = 300
    kx3, kx4 = jax.random.split(kx2)
    y1 = jax.random.normal(kx3, (B2, 256), jnp.float32)
    y2 = jax.random.normal(kx4, (B2, 256), jnp.float32)
    out2 = jax.block_until_ready(my_model_forward(y1, y2, prepared, block_b=128))
    assert out2.shape == (B2, 2)
    ref2 = _reference(y1, y2, prepared)
    assert jnp.allclose(out2, ref2, atol=2e-2, rtol=2e-2)

    print("KERNEL_OK")
</pallas_src>

<mosaic_0001>
module attributes {stable_mosaic.version = 11 : i64} {
  func.func @mlp_kernel(%arg0: i32, %arg1: memref<8x256xf32, #tpu.memory_space<vmem>>, %arg2: memref<8x256xf32, #tpu.memory_space<vmem>>, %arg3: memref<512x64xbf16, #tpu.memory_space<vmem>>, %arg4: memref<1x64xf32, #tpu.memory_space<vmem>>, %arg5: memref<64x2xbf16, #tpu.memory_space<vmem>>, %arg6: memref<1x2xf32, #tpu.memory_space<vmem>>, %arg7: memref<8x2xf32, #tpu.memory_space<vmem>>) attributes {dimension_semantics = [#tpu.dimension_semantics<parallel>], iteration_bounds = array<i64: 1>, scalar_prefetch = 0 : i64, scratch_operands = 0 : i64, tpu.core_type = #tpu.core_type<tc>, window_params = [{transform_indices = @transform_0, window_bounds = array<i64: 8, 256>}, {transform_indices = @transform_1, window_bounds = array<i64: 8, 256>}, {pipeline_mode = #tpu.pipeline_mode<synchronous>, transform_indices = @transform_2, window_bounds = array<i64: 512, 64>}, {pipeline_mode = #tpu.pipeline_mode<synchronous>, transform_indices = @transform_3, window_bounds = array<i64: 1, 64>}, {pipeline_mode = #tpu.pipeline_mode<synchronous>, transform_indices = @transform_4, window_bounds = array<i64: 64, 2>}, {pipeline_mode = #tpu.pipeline_mode<synchronous>, transform_indices = @transform_5, window_bounds = array<i64: 1, 2>}, {transform_indices = @transform_6, window_bounds = array<i64: 8, 2>}]} {
    %c0 = arith.constant 0 : index
    %c0_0 = arith.constant 0 : index
    %0 = vector.load %arg1[%c0, %c0_0] : memref<8x256xf32, #tpu.memory_space<vmem>>, vector<8x256xf32>
    %1 = arith.truncf %0 : vector<8x256xf32> to vector<8x256xbf16>
    %c0_1 = arith.constant 0 : index
    %c0_2 = arith.constant 0 : index
    %2 = vector.load %arg2[%c0_1, %c0_2] : memref<8x256xf32, #tpu.memory_space<vmem>>, vector<8x256xf32>
    %3 = arith.truncf %2 : vector<8x256xf32> to vector<8x256xbf16>
    %c0_3 = arith.constant 0 : index
    %c0_4 = arith.constant 0 : index
    %4 = vector.load %arg3[%c0_3, %c0_4] : memref<512x64xbf16, #tpu.memory_space<vmem>>, vector<256x64xbf16>
    %cst = arith.constant dense<0.000000e+00> : vector<8x64xf32>
    %5 = tpu.matmul %1, %4, %cst {dimension_numbers = #tpu.dot_dimension_numbers<[1], [0], [0], [1], [0, 0, 1, 1], [], []>} : vector<8x256xbf16>, vector<256x64xbf16>, vector<8x64xf32> -> vector<8x64xf32>
    %c256 = arith.constant 256 : index
    %c0_5 = arith.constant 0 : index
    %6 = vector.load %arg3[%c256, %c0_5] : memref<512x64xbf16, #tpu.memory_space<vmem>>, vector<256x64xbf16>
    %cst_6 = arith.constant dense<0.000000e+00> : vector<8x64xf32>
    %7 = tpu.matmul %3, %6, %cst_6 {dimension_numbers = #tpu.dot_dimension_numbers<[1], [0], [0], [1], [0, 0, 1, 1], [], []>} : vector<8x256xbf16>, vector<256x64xbf16>, vector<8x64xf32> -> vector<8x64xf32>
    %8 = arith.addf %5, %7 : vector<8x64xf32>
    %c0_7 = arith.constant 0 : index
    %c0_8 = arith.constant 0 : index
    %9 = vector.load %arg4[%c0_7, %c0_8] : memref<1x64xf32, #tpu.memory_space<vmem>>, vector<1x64xf32>
    %10 = vector.broadcast %9 : vector<1x64xf32> to vector<8x64xf32>
    %11 = arith.addf %8, %10 : vector<8x64xf32>
    %cst_9 = arith.constant 0.000000e+00 : f32
    %12 = vector.broadcast %cst_9 : f32 to vector<8x64xf32>
    %13 = arith.maximumf %11, %12 : vector<8x64xf32>
    %14 = arith.truncf %13 : vector<8x64xf32> to vector<8x64xbf16>
    %c0_10 = arith.constant 0 : index
    %c0_11 = arith.constant 0 : index
    %15 = vector.load %arg5[%c0_10, %c0_11] : memref<64x2xbf16, #tpu.memory_space<vmem>>, vector<64x2xbf16>
    %cst_12 = arith.constant dense<0.000000e+00> : vector<8x2xf32>
    %16 = tpu.matmul %14, %15, %cst_12 {dimension_numbers = #tpu.dot_dimension_numbers<[1], [0], [0], [1], [0, 0, 1, 1], [], []>} : vector<8x64xbf16>, vector<64x2xbf16>, vector<8x2xf32> -> vector<8x2xf32>
    %c0_13 = arith.constant 0 : index
    %c0_14 = arith.constant 0 : index
    %17 = vector.load %arg6[%c0_13, %c0_14] : memref<1x2xf32, #tpu.memory_space<vmem>>, vector<1x2xf32>
    %18 = vector.broadcast %17 : vector<1x2xf32> to vector<8x2xf32>
    %19 = arith.addf %16, %18 : vector<8x2xf32>
    %c0_15 = arith.constant 0 : index
    %c0_16 = arith.constant 0 : index
    %20 = vector.load %arg7[%c0_15, %c0_16] : memref<8x2xf32, #tpu.memory_space<vmem>>, vector<8x2xf32>
    tpu.vector_store %arg7[%c0_15, %c0_16], %19 {strides = array<i32>} : memref<8x2xf32, #tpu.memory_space<vmem>>, vector<8x2xf32>,
    return
  }
  func.func @transform_0(%arg0: i32) -> (i32, i32) {
    %c0_i32 = arith.constant 0 : i32
    %c0_i32_0 = arith.constant 0 : i32
    return %arg0, %c0_i32 : i32, i32
  }
  func.func @transform_1(%arg0: i32) -> (i32, i32) {
    %c0_i32 = arith.constant 0 : i32
    %c0_i32_0 = arith.constant 0 : i32
    return %arg0, %c0_i32 : i32, i32
  }
  func.func @transform_2(%arg0: i32) -> (i32, i32) {
    %c0_i32 = arith.constant 0 : i32
    %c0_i32_0 = arith.constant 0 : i32
    %c0_i32_1 = arith.constant 0 : i32
    return %c0_i32, %c0_i32_0 : i32, i32
  }
  func.func @transform_3(%arg0: i32) -> (i32, i32) {
    %c0_i32 = arith.constant 0 : i32
    %c0_i32_0 = arith.constant 0 : i32
    %c0_i32_1 = arith.constant 0 : i32
    return %c0_i32, %c0_i32_0 : i32, i32
  }
  func.func @transform_4(%arg0: i32) -> (i32, i32) {
    %c0_i32 = arith.constant 0 : i32
    %c0_i32_0 = arith.constant 0 : i32
    %c0_i32_1 = arith.constant 0 : i32
    return %c0_i32, %c0_i32_0 : i32, i32
  }
  func.func @transform_5(%arg0: i32) -> (i32, i32) {
    %c0_i32 = arith.constant 0 : i32
    %c0_i32_0 = arith.constant 0 : i32
    %c0_i32_1 = arith.constant 0 : i32
    return %c0_i32, %c0_i32_0 : i32, i32
  }
  func.func @transform_6(%arg0: i32) -> (i32, i32) {
    %c0_i32 = arith.constant 0 : i32
    %c0_i32_0 = arith.constant 0 : i32
    return %arg0, %c0_i32 : i32, i32
  }
}

</mosaic_0001>

<bundles_post_ra>
// kernel: my_model_forward.1
= control target key start
LH: loop header
LB: loop body
LE: loop exit
PB: predicated region body
PF: predicated region fallthrough
CT: control target
= control target key end

     0   :  { %11 = vsyncpa [#allocation3], 0  ;;  %vm418_vm0 = vcmask 523264   ;;  %vm435_vm1 = vcmask 15360   ;;  %s846_s0 = inlined_call_operand.vmem [shape: f32[2,256], index: 0, kind: input, shape index: {}]   ;;  %s847_s1 = inlined_call_operand.vmem [shape: f32[2,256], index: 1, kind: input, shape index: {}]   ;;  %s848_s2 = inlined_call_operand.vmem [shape: bf16[512,64], index: 2, kind: input, shape index: {}]   ;;  %s849_s3 = inlined_call_operand.vmem [shape: f32[1,64], index: 3, kind: input, shape index: {}]   ;;  %s850_s4 = inlined_call_operand.vmem [shape: bf16[64,2], index: 4, kind: input, shape index: {}]   ;;  %s851_s5 = inlined_call_operand.vmem [shape: f32[1,2], index: 5, kind: input, shape index: {}]   ;;  %s852_s6 = inlined_call_operand.hbm [shape: f32[2,2], index: 6, kind: output, shape index: {}]  }
   0x1   :  { %v623_v0 = vld [vmem:[%s848_s2 + $0xb8] sm:$0xff]  ;;  %v622_v4 = vld [vmem:[%s848_s2 + $0xb0] sm:$0xff]  ;;  %v621_v8 = vld [vmem:[%s848_s2 + $0xa8] sm:$0xff] }
   0x2   :  { %v631_v1 = vld [vmem:[%s848_s2 + $0xf8] sm:$0xff]  ;;  %227 = vmatpush.bf16.msra.mxu0 %v623_v0  ;;  %v630_v5 = vld [vmem:[%s848_s2 + $0xf0] sm:$0xff]  ;;  %v629_v9 = vld [vmem:[%s848_s2 + $0xe8] sm:$0xff] }
   0x3   :  { %v607_v2 = vld [vmem:[%s848_s2 + $0x38] sm:$0xff]  ;;  %240 = vmatpush.bf16.msra.mxu1 %v631_v1  ;;  %v606_v6 = vld [vmem:[%s848_s2 + $0x30] sm:$0xff]  ;;  %v605_v10 = vld [vmem:[%s848_s2 + $0x28] sm:$0xff] }
   0x4   :  { %v615_v3 = vld [vmem:[%s848_s2 + $0x78] sm:$0xff]  ;;  %349 = vmatpush.bf16.msra.mxu2 %v607_v2  ;;  %v614_v7 = vld [vmem:[%s848_s2 + $0x70] sm:$0xff]  ;;  %v613_v11 = vld [vmem:[%s848_s2 + $0x68] sm:$0xff] }
   0x5   :  { %362 = vmatpush.bf16.msra.mxu3 %v615_v3  ;;  %v620_v12 = vld [vmem:[%s848_s2 + $0xa0] sm:$0xff]  ;;  %v27_v18 = vld [vmem:[%s846_s0 + $0x8] sm:$0xf]  ;;  %v28_v19 = vld [vmem:[%s846_s0 + $0xc] sm:$0xf] }
   0x6   :  { %228 = vmatpush.bf16.msra.mxu0 %v622_v4  ;;  %v628_v13 = vld [vmem:[%s848_s2 + $0xe0] sm:$0xff]  ;;  %v619_v20 = vld [vmem:[%s848_s2 + $0x98] sm:$0xff]  ;;  %37 = vst [vmem:[#allocation1 + $0x2] ss:$4 sm:$0xff] %v27_v18  ;;  %v618_v24 = vld [vmem:[%s848_s2 + $0x90] sm:$0xff] }
   0x7   :  { %241 = vmatpush.bf16.msra.mxu1 %v630_v5  ;;  %v604_v14 = vld [vmem:[%s848_s2 + $0x20] sm:$0xff]  ;;  %v627_v21 = vld [vmem:[%s848_s2 + $0xd8] sm:$0xff]  ;;  %39 = vst [vmem:[#allocation1 + $0x3] ss:$4 sm:$0xff] %v28_v19  ;;  %v626_v25 = vld [vmem:[%s848_s2 + $0xd0] sm:$0xff] }
   0x8   :  { %350 = vmatpush.bf16.msra.mxu2 %v606_v6  ;;  %v612_v15 = vld [vmem:[%s848_s2 + $0x60] sm:$0xff]  ;;  %v603_v22 = vld [vmem:[%s848_s2 + $0x18] sm:$0xff]  ;;  %v602_v26 = vld [vmem:[%s848_s2 + $0x10] sm:$0xff] }
   0x9   :  { %363 = vmatpush.bf16.msra.mxu3 %v614_v7  ;;  %v25_v16 = vld [vmem:[%s846_s0] sm:$0xf]  ;;  %v26_v17 = vld [vmem:[%s846_s0 + $0x4] sm:$0xf]  ;;  %v611_v23 = vld [vmem:[%s848_s2 + $0x58] sm:$0xff] }
   0xa   :  { %229 = vmatpush.bf16.msra.mxu0 %v621_v8  ;;  %33 = vst [vmem:[#allocation1] ss:$4 sm:$0xff] %v25_v16  ;;  %v610_v27 = vld [vmem:[%s848_s2 + $0x50] sm:$0xff]  ;;  %v617_v28 = vld [vmem:[%s848_s2 + $0x88] sm:$0xff]  ;;  %v46_v29 = vld [vmem:[%s847_s1] sm:$0xf] }
   0xb   :  { %242 = vmatpush.bf16.msra.mxu1 %v629_v9  ;;  %35 = vst [vmem:[#allocation1 + $0x1] ss:$4 sm:$0xff] %v26_v17  ;;  %v625_v30 = vld [vmem:[%s848_s2 + $0xc8] sm:$0xff]  ;;  %v47_v31 = vld [vmem:[%s847_s1 + $0x4] sm:$0xf]  ;;  %v635_v48 = vld [vmem:[%s850_s4 + $0x18] sm:$0xff] }
   0xc   :  { %351 = vmatpush.bf16.msra.mxu2 %v605_v10  ;;  %v48_v32 = vld [vmem:[%s847_s1 + $0x8] sm:$0xf]  ;;  %v49_v37 = vld [vmem:[%s847_s1 + $0xc] sm:$0xf]  ;;  %v616_v38 = vld [vmem:[%s848_s2 + $0x80] sm:$0xff] }
   0xd   :  { %364 = vmatpush.bf16.msra.mxu3 %v613_v11  ;;  %v601_v35 = vld [vmem:[%s848_s2 + $0x8] sm:$0xff]  ;;  %v624_v39 = vld [vmem:[%s848_s2 + $0xc0] sm:$0xff]  ;;  %v634_v49 = vld [vmem:[%s850_s4 + $0x10] sm:$0xff] }
   0xe   :  { %230 = vmatpush.bf16.msra.mxu0 %v620_v12  ;;  %v609_v36 = vld [vmem:[%s848_s2 + $0x48] sm:$0xff]  ;;  %v600_v40 = vld [vmem:[%s848_s2] sm:$0xff] }
   0xf   :  { %243 = vmatpush.bf16.msra.mxu1 %v628_v13  ;;  %v608_v41 = vld [vmem:[%s848_s2 + $0x40] sm:$0xff]  ;;  %v633_v50 = vld [vmem:[%s850_s4 + $0x8] sm:$0xff] }
  0x10   :  { %352 = vmatpush.bf16.msra.mxu2 %v604_v14  ;;  %v632_v51 = vld [vmem:[%s850_s4] sm:$0xff] }
  0x11   :  { %365 = vmatpush.bf16.msra.mxu3 %v612_v15  ;;  %v639_v58 = vld [vmem:[%s849_s3] ss:$0 sm:$0xff] }
  0x12   :  { %231 = vmatpush.bf16.msra.mxu0 %v619_v20  ;;  %v40_v33 = vld.sshfl [vmem:[#allocation1] sm:$0xff pattern:$0x73625140]  ;;  %v41_v34 = vld.sshfl [vmem:[#allocation1 + $0x8] sm:$0xff pattern:$0x73625140] }
  0x13   :  { %244 = vmatpush.bf16.msra.mxu1 %v627_v21  ;;  %54 = vst [vmem:[#allocation1] ss:$4 sm:$0xff] %v46_v29  ;;  %v44_v42 = vpack.c.bf16 %v40_v33, %v40_v33  ;;  %v45_v43 = vpack.c.bf16 %v41_v34, %v41_v34  ;;  %v640_v3 = vld [vmem:[%s851_s5] ss:$0 sm:$0xff] }
  0x14   :  { %353 = vmatpush.bf16.msra.mxu2 %v603_v22  ;;  %56 = vst [vmem:[#allocation1 + $0x1] ss:$4 sm:$0xff] %v47_v31 }
  0x15   :  { %366 = vmatpush.bf16.msra.mxu3 %v611_v23  ;;  %58 = vst [vmem:[#allocation1 + $0x2] ss:$4 sm:$0xff] %v48_v32 }
  0x16   :  { %232 = vmatpush.bf16.msra.mxu0 %v618_v24  ;;  %60 = vst [vmem:[#allocation1 + $0x3] ss:$4 sm:$0xff] %v49_v37 }
  0x17   :  { %245 = vmatpush.bf16.msra.mxu1 %v626_v25 }
  0x18   :  { %354 = vmatpush.bf16.msra.mxu2 %v602_v26 }
  0x19   :  { %367 = vmatpush.bf16.msra.mxu3 %v610_v27 }
  0x1a   :  { %233 = vmatpush.bf16.msra.mxu0 %v617_v28 }
  0x1b   :  { %246 = vmatpush.bf16.msra.mxu1 %v625_v30 }
  0x1c   :  { %355 = vmatpush.bf16.msra.mxu2 %v601_v35 }
  0x1d   :  { %368 = vmatpush.bf16.msra.mxu3 %v609_v36  ;;  %v61_v44 = vld.sshfl [vmem:[#allocation1] sm:$0xff pattern:$0x73625140]  ;;  %v62_v45 = vld.sshfl [vmem:[#allocation1 + $0x8] sm:$0xff pattern:$0x73625140] }
  0x1e   :  { %234 = vmatpush.bf16.msra.mxu0 %v616_v38  ;;  %v65_v46 = vpack.c.bf16 %v61_v44, %v61_v44  ;;  %v66_v47 = vpack.c.bf16 %v62_v45, %v62_v45 }
  0x1f   :  { %247 = vmatpush.bf16.msra.mxu1 %v624_v39 }
  0x20   :  { %356 = vmatpush.bf16.msra.mxu2 %v600_v40 }
  0x21   :  { %369 = vmatpush.bf16.msra.mxu3 %v608_v41  ;;  %235 = vmatmul.bf16.vlgmr.msra.gmra.mxu0 %v65_v46 }
  0x22   :  { %248 = vmatmul.bf16.vlgmr.msra.gmra.mxu1 %v66_v47  ;;  %426 = vmatpush.bf16.msrb.mxu0 %v635_v48 }
  0x23   :  { %357 = vmatmul.bf16.vlgmr.msra.gmra.mxu2 %v44_v42 }
  0x24   :  { %370 = vmatmul.bf16.vlgmr.msra.gmra.mxu3 %v45_v43 }
  0x26   :  { %427 = vmatpush.bf16.msrb.mxu0 %v634_v49 }
  0x2a   :  { %428 = vmatpush.bf16.msrb.mxu0 %v633_v50 }
  0x2e   :  { %429 = vmatpush.bf16.msrb.mxu0 %v632_v51 }
  0x9e   :  { %v236_v52 = vpop.f32.mrf.mxu0 }
  0x9f   :  { %v249_v53 = vpop.f32.mrf.mxu1 }
  0xa0   :  { %v250_v54 = vadd.f32 %v249_v53, %v236_v52 }
  0xa6   :  { %v358_v55 = vpop.f32.mrf.mxu2  ;;  %v238_v60 = vpop.f32.mrf.mxu0 }
  0xa7   :  { %v371_v56 = vpop.f32.mrf.mxu3  ;;  %v359_v57 = vadd.f32 %v358_v55, %v250_v54  ;;  %v251_v61 = vpop.f32.mrf.mxu1 }
  0xa9   :  { %v372_v59 = vadd.f32 %v371_v56, %v359_v57 }
  0xab   :  { %v379_v62 = vadd.f32 %v639_v58, %v372_v59 }
  0xad   :  { %v380_v63 = vmax.f32 %v379_v62, 0.0 }
  0xae   :  { %v360_v0 = vpop.f32.mrf.mxu2 }
  0xaf   :  { %v373_v1 = vpop.f32.mrf.mxu3  ;;  %v381_v2 = vpack.c.bf16 %v380_v63, %v380_v63 }
  0xb1   :  { %599 = vmatmul.msk.bf16.vlgmr.msrb.gmra.mxu0 %vm418_vm0, %v381_v2 }
 0x12e   :  { %v431_v4 = vpop.f32.mrf.mxu0 }
 0x12f   :  { %v432_v5 = vadd.f32 %v640_v3, %v431_v4 }
 0x131   :  { %436 = vst.msk [vmem:[#allocation2] sm:$0xff] %vm435_vm1, %v432_v5 }
 0x136   :  { %v433_v6 = vpop.f32.mrf.mxu0 }
 0x137   :  { %440 = vsyncadd [#allocation3], 96  ;;  %s443_s13 = sshll.u32 %s852_s6, 4  ;;  %s667_s14 = smov [#allocation2]   ;;  %s444_s13 = int_to_ptr.hbm [resolvable:$true] %s443_s13 }
 0x138   :  { %s441_s15 = sshll.u32 %s667_s14, 4  ;;  %s668_s16 = smov 32   ;;  %s442_s15 = int_to_ptr.vmem [resolvable:$true] %s441_s15 }
 0x139   :  { %s669_s17 = smov 2  }
 0x13a   :  { %449 = dma.vmem_to_hbm [thread:$0]  %s442_s15, 32, %s444_s13, [#allocation3], %s668_s16, %s668_s16, %s669_s17  }
 0x13b   :  { %665 = dma.done.wait [#allocation3], 128  }
 0x13c   :  { %666 = vsyncadd [#allocation3], 4294967168 }
 0x13d   :  { %454 = vsyncpa [#allocation3], 1 }

</bundles_post_ra>
